<compile_context>
chip_gen: v7x
topology: tpu7x:2x2x1
jax: 0.10.0
libtpu: 0.0.40
codegen_flags: <defaults>
</compile_context>

<pallas_src>
import jax
import jax.numpy as jnp
from jax.experimental import pallas as pl
from jax.experimental.pallas import tpu as pltpu


# ---------------------------------------------------------------------------
# kernels
# ---------------------------------------------------------------------------

def _lane_packed_kernel(v_ref, e_ref, whi_ref, wlo_ref, b_ref, vout_ref, eout_ref):
    """Lane-packed path: each 128-lane row holds G = 128/Dp batch items.

    The per-batch contraction scalars (v·wv_c, v·we_c), already broadcast over
    their Dp-lane segments, come from one MXU matmul against a block-diagonal
    (128, 256) weight matrix.  The f32 matmul is done as a manual 3-pass bf16
    split (hi*hi + hi*lo + lo*hi): same accuracy class as XLA's default f32
    "bf16_3x", half the MXU passes of Precision.HIGHEST, so the kernel stays
    HBM-bound on every generation (v5e included).
    """
    v = v_ref[...].astype(jnp.float32)        # (tr, 128)
    e = e_ref[...].astype(jnp.float32)        # (tr, 128)
    b = b_ref[...].astype(jnp.float32)        # (8, 128): row0=b_v tiled, row1=b_e tiled

    v_hi = v.astype(jnp.bfloat16)
    v_lo = (v - v_hi.astype(jnp.float32)).astype(jnp.bfloat16)
    w_hi = whi_ref[...]                       # (128, 256) bf16
    w_lo = wlo_ref[...]                       # (128, 256) bf16

    s = (jnp.dot(v_hi, w_hi, preferred_element_type=jnp.float32)
         + jnp.dot(v_hi, w_lo, preferred_element_type=jnp.float32)
         + jnp.dot(v_lo, w_hi, preferred_element_type=jnp.float32))   # (tr, 256)

    sv = s[:, 0:128]                          # v·(w_vv+w_ev) per segment
    se = s[:, 128:256]                        # v·(w_ve+w_vv) per segment

    vout_ref[...] = (e * sv + b[0:1, :]).astype(vout_ref.dtype)
    eout_ref[...] = (e * se + b[1:2, :]).astype(eout_ref.dtype)


def _rowwise_kernel(v_ref, e_ref, p_ref, vout_ref, eout_ref):
    """General path: one batch row per sublane row, D (padded to 128k) on lanes."""
    v = v_ref[...].astype(jnp.float32)        # (tb, Dp)
    e = e_ref[...].astype(jnp.float32)        # (tb, Dp)
    p = p_ref[...].astype(jnp.float32)        # (8, Dp): wv_c, we_c, b_v, b_e, pad

    # per-batch scalars (factored contraction): f32 VPU multiply + lane reduce
    s_v = jnp.sum(v * p[0:1, :], axis=-1, keepdims=True)      # (tb, 1)
    s_e = jnp.sum(v * p[1:2, :], axis=-1, keepdims=True)      # (tb, 1)

    vout_ref[...] = (e * s_v + p[2:3, :]).astype(vout_ref.dtype)
    eout_ref[...] = (e * s_e + p[3:4, :]).astype(eout_ref.dtype)


# ---------------------------------------------------------------------------
# tiling / VMEM policy
# ---------------------------------------------------------------------------

def _round_up(x, m):
    return -(-x // m) * m


def _vmem_capacity_bytes():
    """Physical per-core VMEM; fall back to the smallest (v7x: 64 MiB)."""
    try:
        return int(pltpu.get_tpu_info().vmem_capacity_bytes)
    except Exception:
        return 64 << 20


def _pick_row_tile(n_rows, bytes_per_row, budget_bytes, requested=None):
    """Row tile such that (2 in + 2 out streams) x double-buffering fits
    `budget_bytes`, the tile is a multiple of 8 (or the full extent), and the
    grid has an even number (>= 2 when possible) of steps so both v7x
    TensorCores get work and the input/output pipeline can overlap."""
    if requested is not None:
        tile = max(1, min(int(requested), n_rows))
        if tile < n_rows:
            tile = max(8, (tile // 8) * 8)          # keep the (8, 128) block rule
        return tile
    if n_rows <= 8:
        return n_rows
    cap = max(8, (budget_bytes // (2 * bytes_per_row)) // 8 * 8)
    tile = min(cap, n_rows)
    if tile < n_rows:
        tile = max(8, (tile // 8) * 8)
    steps = -(-n_rows // tile)
    if steps == 1:                                   # force >= 2 pipelined steps
        tile = max(8, _round_up(-(-n_rows // 2), 8))
        steps = -(-n_rows // tile)
    if steps > 1 and steps % 2:                      # prefer an even step count
        cand = max(8, _round_up(-(-n_rows // (steps + 1)), 8))
        if (-(-n_rows // cand)) % 2 == 0:
            tile = cand
    return tile


def _compiler_params(tile_rows, bytes_per_row, param_bytes, cap):
    """Explicit VMEM limit sized from the chosen tile (double-buffered streams
    + resident parameter blocks) so v5e's 16 MiB scoped default never binds and
    v7x's 64 MiB physical VMEM is never exceeded."""
    streamed = 2 * tile_rows * bytes_per_row + 2 * param_bytes
    limit = max(32 << 20, streamed + (6 << 20))
    limit = min(limit, cap - (8 << 20))
    return pltpu.CompilerParams(
        dimension_semantics=("parallel",),
        vmem_limit_bytes=int(limit))


# ---------------------------------------------------------------------------
# wrapper
# ---------------------------------------------------------------------------

def cross_and_compress(v, e, params, block_rows=None):
    """v, e: (B, 1, D).  params: torch-shaped (D, 1) arrays
    (w_vv, w_ev, w_ve, b_v, b_e).

    Returns (v_out, e_out), both (B, 1, D), matching CrossAndCompressUnit.forward.
    """
    B, one, D = v.shape
    assert one == 1 and e.shape == (B, 1, D)
    out_dtype_v, out_dtype_e = v.dtype, e.dtype
    f32 = jnp.float32

    w_vv = params["w_vv"].reshape(D).astype(f32)
    w_ev = params["w_ev"].reshape(D).astype(f32)
    w_ve = params["w_ve"].reshape(D).astype(f32)
    b_v = params["b_v"].reshape(D).astype(f32)
    b_e = params["b_e"].reshape(D).astype(f32)

    # pre-combined weights: only two contractions instead of three
    # (the module's second w_vv definition wins and is used in BOTH branches)
    wv_c = w_vv + w_ev
    we_c = w_ve + w_vv

    v2 = v.reshape(B, D)
    e2 = e.reshape(B, D)

    cap = _vmem_capacity_bytes()
    budget = min(cap // 2, 32 << 20)          # streamed (double-buffered) budget
    stream_bytes = 2 * (jnp.dtype(v.dtype).itemsize + jnp.dtype(e.dtype).itemsize)

    # ---------------- lane-packed path (small D) -----------------------------
    if D <= 64:
        Dp = 1 << (D - 1).bit_length() if D > 1 else 1   # next pow2, divides 128
        G = 128 // Dp                                    # batch items per lane row
        Bp = _round_up(B, G)

        if Dp != D or Bp != B:
            v2p = jnp.zeros((Bp, Dp), v2.dtype).at[:B, :D].set(v2)
            e2p = jnp.zeros((Bp, Dp), e2.dtype).at[:B, :D].set(e2)
        else:
            v2p, e2p = v2, e2
        wv_p = jnp.zeros((Dp,), f32).at[:D].set(wv_c)
        we_p = jnp.zeros((Dp,), f32).at[:D].set(we_c)
        bv_p = jnp.zeros((Dp,), f32).at[:D].set(b_v)
        be_p = jnp.zeros((Dp,), f32).at[:D].set(b_e)

        rows = (Bp * Dp) // 128
        vp = v2p.reshape(rows, 128)          # contiguous reshape (bitcast)
        ep = e2p.reshape(rows, 128)

        # block-diagonal projection:  W[j, l] = w[j % Dp] if seg(j) == seg(l)
        seg = jnp.arange(128) // Dp
        same = seg[:, None] == seg[None, :]
        mv = jnp.where(same, jnp.tile(wv_p, G)[:, None], 0.0).astype(f32)
        me = jnp.where(same, jnp.tile(we_p, G)[:, None], 0.0).astype(f32)
        w_mat = jnp.concatenate([mv, me], axis=1)                  # (128, 256) f32
        w_hi = w_mat.astype(jnp.bfloat16)                          # 3-pass split
        w_lo = (w_mat - w_hi.astype(f32)).astype(jnp.bfloat16)

        bias = (jnp.zeros((8, 128), f32)
                .at[0].set(jnp.tile(bv_p, G))
                .at[1].set(jnp.tile(be_p, G)))

        row_bytes = 128 * stream_bytes
        tr = _pick_row_tile(rows, row_bytes, budget, requested=block_rows)
        param_bytes = 2 * 128 * 256 * 2 + 8 * 128 * 4
        cparams = _compiler_params(tr, row_bytes, param_bytes, cap)

        row_spec = pl.BlockSpec((tr, 128), lambda i: (i, 0))
        out_v, out_e = pl.pallas_call(
            _lane_packed_kernel,
            out_shape=(jax.ShapeDtypeStruct((rows, 128), out_dtype_v),
                       jax.ShapeDtypeStruct((rows, 128), out_dtype_e)),
            grid_spec=pltpu.PrefetchScalarGridSpec(
                num_scalar_prefetch=0,
                grid=(pl.cdiv(rows, tr),),
                in_specs=[row_spec, row_spec,
                          pl.BlockSpec((128, 256), lambda i: (0, 0)),
                          pl.BlockSpec((128, 256), lambda i: (0, 0)),
                          pl.BlockSpec((8, 128), lambda i: (0, 0))],
                out_specs=(row_spec, row_spec)),
            compiler_params=cparams,
        )(vp, ep, w_hi, w_lo, bias)

        out_v = out_v.reshape(Bp, Dp)[:B, :D].reshape(B, 1, D)
        out_e = out_e.reshape(Bp, Dp)[:B, :D].reshape(B, 1, D)
        return out_v, out_e

    # ---------------- general row-wise path ----------------------------------
    Dp = _round_up(D, 128)                   # keep every store lane-dense
    if Dp != D:
        v2p = jnp.zeros((B, Dp), v2.dtype).at[:, :D].set(v2)
        e2p = jnp.zeros((B, Dp), e2.dtype).at[:, :D].set(e2)
    else:
        v2p, e2p = v2, e2

    # all parameters packed into one aligned (8, Dp) tile -> one DMA
    p = (jnp.zeros((8, Dp), f32)
         .at[0, :D].set(wv_c)
         .at[1, :D].set(we_c)
         .at[2, :D].set(b_v)
         .at[3, :D].set(b_e))

    row_bytes = Dp * stream_bytes
    tb = _pick_row_tile(B, row_bytes, budget, requested=block_rows)
    param_bytes = 8 * Dp * 4
    cparams = _compiler_params(tb, row_bytes, param_bytes, cap)
    # TODO(synk): for the B<=8, extremely-large-D corner where even an 8-row
    # tile exceeds the VMEM budget, hoist the two tiny (B,D)x(D,) dots into XLA
    # and make the kernel purely elementwise (tileable along D as well).

    batch_spec = pl.BlockSpec((tb, Dp), lambda i: (i, 0))
    out_v, out_e = pl.pallas_call(
        _rowwise_kernel,
        out_shape=(jax.ShapeDtypeStruct((B, Dp), out_dtype_v),
                   jax.ShapeDtypeStruct((B, Dp), out_dtype_e)),
        grid_spec=pltpu.PrefetchScalarGridSpec(
            num_scalar_prefetch=0,
            grid=(pl.cdiv(B, tb),),
            in_specs=[batch_spec, batch_spec,
                      pl.BlockSpec((8, Dp), lambda i: (0, 0))],
            out_specs=(batch_spec, batch_spec)),
        compiler_params=cparams,
    )(v2p, e2p, p)
    out_v = out_v[:, :D].reshape(B, 1, D)
    out_e = out_e[:, :D].reshape(B, 1, D)
    return out_v, out_e


# ---------------------------------------------------------------------------
# pure-JAX reference (transcription of the PyTorch forward)
# ---------------------------------------------------------------------------

def reference(v, e, params):
    B, _, D = v.shape
    hi = jax.lax.Precision.HIGHEST
    C = jnp.matmul(e.reshape(B, D, 1), v, precision=hi)                  # (B, D, D)
    v_out = (jnp.matmul(C, params["w_vv"], precision=hi)
             + jnp.matmul(C, params["w_ev"], precision=hi) + params["b_v"])
    e_out = (jnp.matmul(C, params["w_ve"], precision=hi)
             + jnp.matmul(C, params["w_vv"], precision=hi) + params["b_e"])
    return v_out.reshape(B, 1, D), e_out.reshape(B, 1, D)


# ---------------------------------------------------------------------------
# demo / self-test
# ---------------------------------------------------------------------------

if __name__ == "__main__":
    def make_inputs(B, D, key):
        kv, ke, k1, k2, k3, k4, k5 = jax.random.split(key, 7)
        v = jax.random.normal(kv, (B, 1, D), dtype=jnp.float32)
        e = jax.random.normal(ke, (B, 1, D), dtype=jnp.float32)
        params = {
            "w_vv": jax.random.normal(k1, (D, 1), dtype=jnp.float32),
            "w_ev": jax.random.normal(k2, (D, 1), dtype=jnp.float32),
            "w_ve": jax.random.normal(k3, (D, 1), dtype=jnp.float32),
            "b_v": jax.random.normal(k4, (D, 1), dtype=jnp.float32),
            "b_e": jax.random.normal(k5, (D, 1), dtype=jnp.float32),
        }
        return v, e, params

    keys = jax.random.split(jax.random.PRNGKey(0), 4)
    # (B, D, tolerance).  The lane-packed path uses 3-pass bf16 MXU math
    # (XLA's standard f32 matmul class), hence the slightly looser tolerance;
    # the row-wise path is exact f32 VPU math.
    cases = [
        (8, 32, 1e-3),     # lane-packed, aligned (4 batch items per lane row)
        (6, 24, 1e-3),     # lane-packed via padding (D->32, B->8)
        (16, 128, 1e-4),   # row-wise, lane-dense, 2-step batch grid
        (5, 160, 1e-4),    # row-wise via D padding (160 -> 256 lanes)
    ]
    for (Bc, Dc, tol), key in zip(cases, keys):
        v, e, params = make_inputs(Bc, Dc, key)
        v_out, e_out = cross_and_compress(v, e, params)
        jax.block_until_ready((v_out, e_out))
        v_ref, e_ref = reference(v, e, params)
        assert v_out.shape == (Bc, 1, Dc) and e_out.shape == (Bc, 1, Dc)
        assert jnp.allclose(v_out, v_ref, atol=tol, rtol=tol), (Bc, Dc, "v")
        assert jnp.allclose(e_out, e_ref, atol=tol, rtol=tol), (Bc, Dc, "e")

    print("KERNEL_OK")
</pallas_src>

<mosaic_0001>
module attributes {stable_mosaic.version = 11 : i64} {
  func.func @_lane_packed_kernel(%arg0: i32, %arg1: memref<2x128xf32, #tpu.memory_space<vmem>>, %arg2: memref<2x128xf32, #tpu.memory_space<vmem>>, %arg3: memref<128x256xbf16, #tpu.memory_space<vmem>>, %arg4: memref<128x256xbf16, #tpu.memory_space<vmem>>, %arg5: memref<8x128xf32, #tpu.memory_space<vmem>>, %arg6: memref<2x128xf32, #tpu.memory_space<vmem>>, %arg7: memref<2x128xf32, #tpu.memory_space<vmem>>) attributes {dimension_semantics = [#tpu.dimension_semantics<parallel>], iteration_bounds = array<i64: 1>, scalar_prefetch = 0 : i64, scratch_operands = 0 : i64, tpu.core_type = #tpu.core_type<tc>, window_params = [{transform_indices = @transform_0, window_bounds = array<i64: 2, 128>}, {transform_indices = @transform_1, window_bounds = array<i64: 2, 128>}, {pipeline_mode = #tpu.pipeline_mode<synchronous>, transform_indices = @transform_2, window_bounds = array<i64: 128, 256>}, {pipeline_mode = #tpu.pipeline_mode<synchronous>, transform_indices = @transform_3, window_bounds = array<i64: 128, 256>}, {pipeline_mode = #tpu.pipeline_mode<synchronous>, transform_indices = @transform_4, window_bounds = array<i64: 8, 128>}, {transform_indices = @transform_5, window_bounds = array<i64: 2, 128>}, {transform_indices = @transform_6, window_bounds = array<i64: 2, 128>}]} {
    %c0 = arith.constant 0 : index
    %c0_0 = arith.constant 0 : index
    %0 = vector.load %arg1[%c0, %c0_0] : memref<2x128xf32, #tpu.memory_space<vmem>>, vector<2x128xf32>
    %c0_1 = arith.constant 0 : index
    %c0_2 = arith.constant 0 : index
    %1 = vector.load %arg2[%c0_1, %c0_2] : memref<2x128xf32, #tpu.memory_space<vmem>>, vector<2x128xf32>
    %c0_3 = arith.constant 0 : index
    %c0_4 = arith.constant 0 : index
    %2 = vector.load %arg5[%c0_3, %c0_4] : memref<8x128xf32, #tpu.memory_space<vmem>>, vector<8x128xf32>
    %3 = arith.truncf %0 : vector<2x128xf32> to vector<2x128xbf16>
    %4 = arith.extf %3 : vector<2x128xbf16> to vector<2x128xf32>
    %5 = arith.subf %0, %4 : vector<2x128xf32>
    %6 = arith.truncf %5 : vector<2x128xf32> to vector<2x128xbf16>
    %c0_5 = arith.constant 0 : index
    %c0_6 = arith.constant 0 : index
    %7 = vector.load %arg3[%c0_5, %c0_6] : memref<128x256xbf16, #tpu.memory_space<vmem>>, vector<128x256xbf16>
    %c0_7 = arith.constant 0 : index
    %c0_8 = arith.constant 0 : index
    %8 = vector.load %arg4[%c0_7, %c0_8] : memref<128x256xbf16, #tpu.memory_space<vmem>>, vector<128x256xbf16>
    %cst = arith.constant dense<0.000000e+00> : vector<2x256xf32>
    %9 = tpu.matmul %3, %7, %cst {dimension_numbers = #tpu.dot_dimension_numbers<[1], [0], [0], [1], [0, 0, 1, 1], [], []>} : vector<2x128xbf16>, vector<128x256xbf16>, vector<2x256xf32> -> vector<2x256xf32>
    %cst_9 = arith.constant dense<0.000000e+00> : vector<2x256xf32>
    %10 = tpu.matmul %3, %8, %cst_9 {dimension_numbers = #tpu.dot_dimension_numbers<[1], [0], [0], [1], [0, 0, 1, 1], [], []>} : vector<2x128xbf16>, vector<128x256xbf16>, vector<2x256xf32> -> vector<2x256xf32>
    %11 = arith.addf %9, %10 : vector<2x256xf32>
    %cst_10 = arith.constant dense<0.000000e+00> : vector<2x256xf32>
    %12 = tpu.matmul %6, %7, %cst_10 {dimension_numbers = #tpu.dot_dimension_numbers<[1], [0], [0], [1], [0, 0, 1, 1], [], []>} : vector<2x128xbf16>, vector<128x256xbf16>, vector<2x256xf32> -> vector<2x256xf32>
    %13 = arith.addf %11, %12 : vector<2x256xf32>
    %14 = vector.extract_strided_slice %13 {offsets = [0, 0], sizes = [2, 128], strides = [1, 1]} : vector<2x256xf32> to vector<2x128xf32>
    %15 = vector.extract_strided_slice %13 {offsets = [0, 128], sizes = [2, 128], strides = [1, 1]} : vector<2x256xf32> to vector<2x128xf32>
    %16 = arith.mulf %1, %14 : vector<2x128xf32>
    %17 = vector.extract_strided_slice %2 {offsets = [0, 0], sizes = [1, 128], strides = [1, 1]} : vector<8x128xf32> to vector<1x128xf32>
    %18 = vector.broadcast %17 : vector<1x128xf32> to vector<2x128xf32>
    %19 = arith.addf %16, %18 : vector<2x128xf32>
    %c0_11 = arith.constant 0 : index
    %c0_12 = arith.constant 0 : index
    %20 = vector.load %arg6[%c0_11, %c0_12] : memref<2x128xf32, #tpu.memory_space<vmem>>, vector<2x128xf32>
    tpu.vector_store %arg6[%c0_11, %c0_12], %19 {strides = array<i32>} : memref<2x128xf32, #tpu.memory_space<vmem>>, vector<2x128xf32>,
    %21 = arith.mulf %1, %15 : vector<2x128xf32>
    %22 = vector.extract_strided_slice %2 {offsets = [1, 0], sizes = [1, 128], strides = [1, 1]} : vector<8x128xf32> to vector<1x128xf32>
    %23 = vector.broadcast %22 : vector<1x128xf32> to vector<2x128xf32>
    %24 = arith.addf %21, %23 : vector<2x128xf32>
    %c0_13 = arith.constant 0 : index
    %c0_14 = arith.constant 0 : index
    %25 = vector.load %arg7[%c0_13, %c0_14] : memref<2x128xf32, #tpu.memory_space<vmem>>, vector<2x128xf32>
    tpu.vector_store %arg7[%c0_13, %c0_14], %24 {strides = array<i32>} : memref<2x128xf32, #tpu.memory_space<vmem>>, vector<2x128xf32>,
    return
  }
  func.func @transform_0(%arg0: i32) -> (i32, i32) {
    %c0_i32 = arith.constant 0 : i32
    %c0_i32_0 = arith.constant 0 : i32
    return %arg0, %c0_i32 : i32, i32
  }
  func.func @transform_1(%arg0: i32) -> (i32, i32) {
    %c0_i32 = arith.constant 0 : i32
    %c0_i32_0 = arith.constant 0 : i32
    return %arg0, %c0_i32 : i32, i32
  }
  func.func @transform_2(%arg0: i32) -> (i32, i32) {
    %c0_i32 = arith.constant 0 : i32
    %c0_i32_0 = arith.constant 0 : i32
    %c0_i32_1 = arith.constant 0 : i32
    return %c0_i32, %c0_i32_0 : i32, i32
  }
  func.func @transform_3(%arg0: i32) -> (i32, i32) {
    %c0_i32 = arith.constant 0 : i32
    %c0_i32_0 = arith.constant 0 : i32
    %c0_i32_1 = arith.constant 0 : i32
    return %c0_i32, %c0_i32_0 : i32, i32
  }
  func.func @transform_4(%arg0: i32) -> (i32, i32) {
    %c0_i32 = arith.constant 0 : i32
    %c0_i32_0 = arith.constant 0 : i32
    %c0_i32_1 = arith.constant 0 : i32
    return %c0_i32, %c0_i32_0 : i32, i32
  }
  func.func @transform_5(%arg0: i32) -> (i32, i32) {
    %c0_i32 = arith.constant 0 : i32
    %c0_i32_0 = arith.constant 0 : i32
    return %arg0, %c0_i32 : i32, i32
  }
  func.func @transform_6(%arg0: i32) -> (i32, i32) {
    %c0_i32 = arith.constant 0 : i32
    %c0_i32_0 = arith.constant 0 : i32
    return %arg0, %c0_i32 : i32, i32
  }
}

</mosaic_0001>

<bundles_post_ra>
// kernel: tpu_custom_call.1
= control target key start
LH: loop header
LB: loop body
LE: loop exit
PB: predicated region body
PF: predicated region fallthrough
CT: control target
= control target key end

     0   :  { %12 = vsyncpa [#allocation3], 0  ;;  %s778_s0 = inlined_call_operand.hbm [shape: f32[2,128], index: 0, kind: input, shape index: {}]   ;;  %s779_s1 = inlined_call_operand.vmem [shape: f32[2,128], index: 1, kind: input, shape index: {}]   ;;  %s780_s2 = inlined_call_operand.hbm [shape: bf16[128,256], index: 2, kind: input, shape index: {}]   ;;  %s781_s3 = inlined_call_operand.hbm [shape: bf16[128,256], index: 3, kind: input, shape index: {}]   ;;  %s782_s4 = inlined_call_operand.vmem [shape: f32[8,128], index: 4, kind: input, shape index: {}]   ;;  %s783_s5 = inlined_call_operand.hbm [shape: f32[2,128], index: 5, kind: output, shape index: {0}]   ;;  %s784_s6 = inlined_call_operand.hbm [shape: f32[2,128], index: 6, kind: output, shape index: {1}]  }
   0x1   :  { %13 = vsyncpa [#allocation6], 0 }
   0x2   :  { %14 = vsyncpa [#allocation4], 0 }
   0x3   :  { %15 = vsyncpa [#allocation10], 0  ;;  %s644_s21 = smov [#allocation5]   ;;  %s526_s25 = scalar_lea.hbm %s780_s2, 2048 }
   0x4   :  { %s33_s22 = sshll.u32 %s644_s21, 4  ;;  %p527_p0 = scmp.ne.s32.totalorder %s780_s2, %s526_s25  ;;  %s34_s22 = int_to_ptr.vmem [resolvable:$true] %s33_s22 }
   0x5   :  { %p530_p1 = scmp.lt.u32.totalorder %s526_s25, %s780_s2 }
   0x7   :  { %p532_p2 = pnand %p530_p1, %p527_p0 }
   0x9   :  { %535 = shalt.err (!%p532_p2)
}
   0xa   :  { %s536_s30 = scalar_lea.vmem %s34_s22, 2048  ;;  %p541_p4 = scmp.lt.s32.totalorder %s34_s22, %s34_s22 }
   0xb   :  { %p537_p3 = scmp.ne.s32.totalorder %s34_s22, %s536_s30  ;;  %p542_p5 = scmp.lt.s32.totalorder %s536_s30, %s536_s30 }
   0xd   :  { %p543_p6 = por %p542_p5, %p541_p4 }
   0xf   :  { %p544_p7 = pnand %p543_p6, %p537_p3 }
  0x11   :  { %547 = shalt.err (!%p544_p7)
}
  0x12   :  { %s645_s7 = smov 128   ;;  %s646_s8 = smov 8  }
  0x13   :  { %39 = dma.hbm_to_vmem [thread:$0]  %s780_s2, 2048, %s34_s22, [#allocation6], %s645_s7, %s645_s7, %s646_s8  }
  0x14   :  { %s647_s11 = smov [#allocation2]   ;;  %s648_s13 = smov [#allocation7]  }
  0x15   :  { %s22_s12 = sshll.u32 %s647_s11, 4  ;;  %s45_s14 = sshll.u32 %s648_s13, 4  ;;  %s23_s12 = int_to_ptr.vmem [resolvable:$true] %s22_s12  ;;  %s46_s14 = int_to_ptr.vmem [resolvable:$true] %s45_s14 }
  0x16   :  { %s548_s17 = scalar_lea.hbm %s778_s0, 32 }
  0x17   :  { %p549_p8 = scmp.ne.s32.totalorder %s778_s0, %s548_s17  ;;  %p552_p9 = scmp.lt.u32.totalorder %s548_s17, %s778_s0 }
  0x19   :  { %p554_p10 = pnand %p552_p9, %p549_p8 }
  0x1b   :  { %557 = shalt.err (!%p554_p10)
}
  0x1c   :  { %s558_s2 = scalar_lea.vmem %s23_s12, 32  ;;  %p563_p12 = scmp.lt.s32.totalorder %s23_s12, %s23_s12 }
  0x1d   :  { %p559_p11 = scmp.ne.s32.totalorder %s23_s12, %s558_s2  ;;  %p564_p13 = scmp.lt.s32.totalorder %s558_s2, %s558_s2 }
  0x1f   :  { %p565_p0 = por %p564_p13, %p563_p12 }
  0x21   :  { %p566_p1 = pnand %p565_p0, %p559_p11 }
  0x23   :  { %569 = shalt.err (!%p566_p1)
}
  0x24   :  { %25 = dma.hbm_to_vmem [thread:$0]  %s778_s0, 32, %s23_s12, [#allocation3]  }
  0x25   :  { %s570_s26 = scalar_lea.hbm %s781_s3, 2048 }
  0x26   :  { %p571_p2 = scmp.ne.s32.totalorder %s781_s3, %s570_s26  ;;  %p574_p3 = scmp.lt.u32.totalorder %s570_s26, %s781_s3 }
  0x28   :  { %p576_p4 = pnand %p574_p3, %p571_p2 }
  0x2a   :  { %579 = shalt.err (!%p576_p4)
}
  0x2b   :  { %s580_s9 = scalar_lea.vmem %s46_s14, 2048  ;;  %p585_p6 = scmp.lt.s32.totalorder %s46_s14, %s46_s14 }
  0x2c   :  { %p581_p5 = scmp.ne.s32.totalorder %s46_s14, %s580_s9  ;;  %p586_p7 = scmp.lt.s32.totalorder %s580_s9, %s580_s9 }
  0x2e   :  { %p587_p8 = por %p586_p7, %p585_p6 }
  0x30   :  { %p588_p9 = pnand %p587_p8, %p581_p5 }
  0x32   :  { %591 = shalt.err (!%p588_p9)
}
  0x33   :  { %51 = dma.hbm_to_vmem [thread:$0]  %s781_s3, 2048, %s46_s14, [#allocation6], %s645_s7, %s645_s7, %s646_s8  }
  0x34   :  { %636 = dma.done.wait [#allocation3], 32  }
  0x35   :  { %637 = vsyncadd [#allocation3], 4294967264 }
  0x36   :  { %638 = dma.done.wait [#allocation6], 4096  }
  0x37   :  { %639 = vsyncadd [#allocation6], 4294963200  ;;  %v649_v0 = vmov 0   ;;  %v478_v1 = vld [vmem:[#allocation5 + $0x4] ss:$8 sps:$4 sm:$0xff]   ;;  %v389_v42 = vlaneseq  ;;  %v66_v45 = vld [vmem:[%s782_s4] sm:$0xff] }
  0x38   :  { %336 = vmatprep.mubr.bf16.mxu0 %v649_v0  ;;  %215 = vmatprep.mubr.bf16.mxu1 %v649_v0  ;;  %v480_v2 = vld [vmem:[#allocation5] ss:$8 sps:$4 sm:$0xff]   ;;  %v481_v3 = vld [vmem:[#allocation5 + $0x14] ss:$8 sps:$4 sm:$0xff]   ;;  %v731_v4 = vld [vmem:[#allocation5 + $0x10] ss:$8 sps:$4 sm:$0xff]  }
  0x39   :  { %304 = vmatprep.subr.bf16.mxu0 %v478_v1  ;;  %v733_v5 = vld [vmem:[#allocation5 + $0x24] ss:$8 sps:$4 sm:$0xff]   ;;  %v736_v6 = vld [vmem:[#allocation5 + $0x20] ss:$8 sps:$4 sm:$0xff]   ;;  %v487_v7 = vld [vmem:[#allocation5 + $0x34] ss:$8 sps:$4 sm:$0xff]  }
  0x3a   :  { %305 = vmatpush1.bf16.msra.mxu0 %v480_v2  ;;  %v739_v8 = vld [vmem:[#allocation5 + $0x30] ss:$8 sps:$4 sm:$0xff]   ;;  %v490_v9 = vld [vmem:[#allocation5 + $0x44] ss:$8 sps:$4 sm:$0xff]   ;;  %v504_v11 = vld [vmem:[#allocation7] ss:$8 sps:$4 sm:$0xff]  }
  0x3b   :  { %306 = vmatprep.subr.bf16.mxu0 %v481_v3  ;;  %v501_v10 = vld [vmem:[#allocation7 + $0x4] ss:$8 sps:$4 sm:$0xff]   ;;  %v505_v12 = vld [vmem:[#allocation7 + $0x14] ss:$8 sps:$4 sm:$0xff]   ;;  %v492_v13 = vld [vmem:[#allocation5 + $0x40] ss:$8 sps:$4 sm:$0xff]  }
  0x3c   :  { %183 = vmatprep.subr.bf16.mxu1 %v501_v10  ;;  %v507_v14 = vld [vmem:[#allocation7 + $0x10] ss:$8 sps:$4 sm:$0xff]   ;;  %v508_v15 = vld [vmem:[#allocation7 + $0x24] ss:$8 sps:$4 sm:$0xff]   ;;  %v493_v16 = vld [vmem:[#allocation5 + $0x54] ss:$8 sps:$4 sm:$0xff]  }
  0x3d   :  { %184 = vmatpush1.bf16.msra.mxu1 %v504_v11  ;;  %v495_v17 = vld [vmem:[#allocation5 + $0x50] ss:$8 sps:$4 sm:$0xff]   ;;  %v510_v18 = vld [vmem:[#allocation7 + $0x20] ss:$8 sps:$4 sm:$0xff]   ;;  %v511_v19 = vld [vmem:[#allocation7 + $0x34] ss:$8 sps:$4 sm:$0xff]  }
  0x3e   :  { %307 = vmatpush1.bf16.msra.mxu0 %v731_v4  ;;  %185 = vmatprep.subr.bf16.mxu1 %v505_v12  ;;  %v496_v20 = vld [vmem:[#allocation5 + $0x64] ss:$8 sps:$4 sm:$0xff]   ;;  %v513_v21 = vld [vmem:[#allocation7 + $0x30] ss:$8 sps:$4 sm:$0xff]   ;;  %v498_v22 = vld [vmem:[#allocation5 + $0x60] ss:$8 sps:$4 sm:$0xff]  }
  0x3f   :  { %308 = vmatprep.subr.bf16.mxu0 %v733_v5  ;;  %v514_v23 = vld [vmem:[#allocation7 + $0x44] ss:$8 sps:$4 sm:$0xff]   ;;  %v499_v24 = vld [vmem:[#allocation5 + $0x74] ss:$8 sps:$4 sm:$0xff]   ;;  %v516_v25 = vld [vmem:[#allocation7 + $0x40] ss:$8 sps:$4 sm:$0xff]  }
  0x40   :  { %v503_v26 = vld [vmem:[#allocation5 + $0x70] ss:$8 sps:$4 sm:$0xff]   ;;  %v64_v27 = vld [vmem:[#allocation2] sm:$0x3]  ;;  %v520_v31 = vld [vmem:[#allocation7 + $0x64] ss:$8 sps:$4 sm:$0xff]  }
  0x41   :  { %186 = vmatpush1.bf16.msra.mxu1 %v507_v14  ;;  %v517_v28 = vld [vmem:[#allocation7 + $0x54] ss:$8 sps:$4 sm:$0xff]   ;;  %v67_v29 = vpack.c.bf16 %v64_v27, %v64_v27  ;;  %v519_v30 = vld [vmem:[#allocation7 + $0x50] ss:$8 sps:$4 sm:$0xff]   ;;  %v522_v32 = vld [vmem:[#allocation7 + $0x60] ss:$8 sps:$4 sm:$0xff]  }
  0x42   :  { %309 = vmatpush1.bf16.msra.mxu0 %v736_v6  ;;  %187 = vmatprep.subr.bf16.mxu1 %v508_v15  ;;  %v523_v33 = vld [vmem:[#allocation7 + $0x74] ss:$8 sps:$4 sm:$0xff]   ;;  %v525_v34 = vld [vmem:[#allocation7 + $0x70] ss:$8 sps:$4 sm:$0xff]   ;;  %v390_v43 = vshrl.u32 %v389_v42, 7  ;;  %s650_s12 = smov [#allocation8]  }
  0x43   :  { %310 = vmatprep.subr.bf16.mxu0 %v487_v7  ;;  %v68_v35 = vunpack.c.l.bf16 %v67_v29  ;;  %v65_v47 = vld [vmem:[%s779_s1] sm:$0x3]  ;;  %s408_s13 = sshll.u32 %s650_s12, 4  ;;  %s651_s14 = smov [#allocation9]   ;;  %s409_s13 = int_to_ptr.vmem [resolvable:$true] %s408_s13 }
  0x44   :  { %v391_v44 = vsub.s32 0, %v390_v43  ;;  %v398_v46 = vsub.s32 1, %v390_v43  ;;  %s418_s15 = sshll.u32 %s651_s14, 4  ;;  %s592_s1 = scalar_lea.vmem %s409_s13, 32  ;;  %s419_s15 = int_to_ptr.vmem [resolvable:$true] %s418_s15 }
  0x45   :  { %188 = vmatpush1.bf16.msra.mxu1 %v510_v18  ;;  %v69_v36 = vsub.f32 %v64_v27, %v68_v35  ;;  %p593_p10 = scmp.ne.s32.totalorder %s409_s13, %s592_s1  ;;  %p597_p11 = scmp.lt.s32.totalorder %s409_s13, %s409_s13 }
  0x46   :  { %311 = vmatpush1.bf16.msra.mxu0 %v739_v8  ;;  %189 = vmatprep.subr.bf16.mxu1 %v511_v19  ;;  %v392_v51 = vrot.slane %v66_v45, %v391_v44  ;;  %v399_v54 = vrot.slane %v66_v45, %v398_v46  ;;  %p598_p12 = scmp.lt.s32.totalorder %s592_s1, %s592_s1 }
  0x47   :  { %312 = vmatprep.subr.bf16.mxu0 %v490_v9  ;;  %v70_v37 = vpack.c.bf16 %v69_v36, %v69_v36 }
  0x48   :  { %p599_p13 = por %p598_p12, %p597_p11 }
  0x49   :  { %190 = vmatpush1.bf16.msra.mxu1 %v513_v21 }
  0x4a   :  { %313 = vmatpush1.bf16.msra.mxu0 %v492_v13  ;;  %191 = vmatprep.subr.bf16.mxu1 %v514_v23  ;;  %p600_p0 = pnand %p599_p13, %p593_p10 }
  0x4b   :  { %314 = vmatprep.subr.bf16.mxu0 %v493_v16 }
  0x4d   :  { %192 = vmatpush1.bf16.msra.mxu1 %v516_v25 }
  0x4e   :  { %315 = vmatpush1.bf16.msra.mxu0 %v495_v17  ;;  %193 = vmatprep.subr.bf16.mxu1 %v517_v28 }
  0x4f   :  { %316 = vmatprep.subr.bf16.mxu0 %v496_v20 }
  0x51   :  { %194 = vmatpush1.bf16.msra.mxu1 %v519_v30 }
  0x52   :  { %317 = vmatpush1.bf16.msra.mxu0 %v498_v22  ;;  %195 = vmatprep.subr.bf16.mxu1 %v520_v31 }
  0x53   :  { %318 = vmatprep.subr.bf16.mxu0 %v499_v24 }
  0x55   :  { %196 = vmatpush1.bf16.msra.mxu1 %v522_v32 }
  0x56   :  { %319 = vmatpush1.bf16.msra.mxu0 %v503_v26  ;;  %197 = vmatprep.subr.bf16.mxu1 %v523_v33 }
  0x57   :  { %345 = vmatprep.subr.bf16.mxu0 %v478_v1 }
  0x59   :  { %337 = vmatmul.mubr.bf16.vlgmr.msra.gmra.mrb[0].mxu0 %v67_v29  ;;  %198 = vmatpush1.bf16.msra.mxu1 %v525_v34 }
  0x5a   :  { %346 = vmatpush1.bf16.msra.mxu0 %v480_v2  ;;  %377 = vmatprep.mubr.bf16.mxu0 %v649_v0 }
  0x5b   :  { %347 = vmatprep.subr.bf16.mxu0 %v481_v3 }
  0x5c   :  { %216 = vmatmul.mubr.bf16.vlgmr.msra.gmra.mrb[0].mxu1 %v67_v29 }
  0x5e   :  { %348 = vmatpush1.bf16.msra.mxu0 %v731_v4 }
  0x5f   :  { %349 = vmatprep.subr.bf16.mxu0 %v733_v5 }
  0x62   :  { %350 = vmatpush1.bf16.msra.mxu0 %v736_v6 }
  0x63   :  { %351 = vmatprep.subr.bf16.mxu0 %v487_v7 }
  0x66   :  { %352 = vmatpush1.bf16.msra.mxu0 %v739_v8 }
  0x67   :  { %353 = vmatprep.subr.bf16.mxu0 %v490_v9 }
  0x6a   :  { %354 = vmatpush1.bf16.msra.mxu0 %v492_v13 }
  0x6b   :  { %355 = vmatprep.subr.bf16.mxu0 %v493_v16 }
  0x6e   :  { %356 = vmatpush1.bf16.msra.mxu0 %v495_v17 }
  0x6f   :  { %357 = vmatprep.subr.bf16.mxu0 %v496_v20 }
  0x72   :  { %358 = vmatpush1.bf16.msra.mxu0 %v498_v22 }
  0x73   :  { %359 = vmatprep.subr.bf16.mxu0 %v499_v24 }
  0x76   :  { %360 = vmatpush1.bf16.msra.mxu0 %v503_v26 }
  0x79   :  { %378 = vmatmul.mubr.bf16.vlgmr.msra.gmra.mrb[0].mxu0 %v70_v37 }
 0x12f   :  { %v217_v38 = vpop.f32.mrb[0].mxu1 }
 0x130   :  { %v219_v39 = vpop.f32.mrb[1].mxu1 }
 0x131   :  { %v221_v40 = vpop.f32.mrb[2].mxu1 }
 0x132   :  { %v222_v41 = vpop.f32.mrb[3].mxu1 }
 0x14c   :  { %v379_v48 = vpop.f32.mrb[0].mxu0 }
 0x14d   :  { %v464_v49 = vadd.f32 %v379_v48, %v217_v38  ;;  %v381_v50 = vpop.f32.mrb[1].mxu0 }
 0x14e   :  { %v465_v52 = vadd.f32 %v381_v50, %v219_v39  ;;  %v383_v53 = vpop.f32.mrb[2].mxu0 }
 0x14f   :  { %v388_v55 = vmul.f32 %v464_v49, %v65_v47  ;;  %v384_v56 = vpop.f32.mrb[3].mxu0 }
 0x150   :  { %v395_v57 = vmul.f32 %v465_v52, %v65_v47 }
 0x151   :  { %v393_v58 = vadd.f32 %v392_v51, %v388_v55 }
 0x152   :  { %v400_v59 = vadd.f32 %v399_v54, %v395_v57 }
 0x153   :  { %394 = vst [vmem:[#allocation8] sm:$0x3] %v393_v58 }
 0x154   :  { %603 = shalt.err (!%p600_p0)
}
 0x155   :  { %s604_s17 = scalar_lea.hbm %s783_s5, 32 }
 0x156   :  { %p605_p1 = scmp.ne.s32.totalorder %s783_s5, %s604_s17  ;;  %p608_p2 = scmp.lt.u32.totalorder %s604_s17, %s783_s5 }
 0x158   :  { %p610_p3 = pnand %p608_p2, %p605_p1 }
 0x15a   :  { %613 = shalt.err (!%p610_p3)
}
 0x15b   :  { %411 = dma.vmem_to_hbm [thread:$0]  %s409_s13, 32, %s783_s5, [#allocation4]   ;;  %401 = vst [vmem:[#allocation9] sm:$0x3] %v400_v59 }
 0x15c   :  { %s614_s23 = scalar_lea.vmem %s419_s15, 32  ;;  %p619_p5 = scmp.lt.s32.totalorder %s419_s15, %s419_s15 }
 0x15d   :  { %p615_p4 = scmp.ne.s32.totalorder %s419_s15, %s614_s23  ;;  %p620_p6 = scmp.lt.s32.totalorder %s614_s23, %s614_s23 }
 0x15f   :  { %p621_p7 = por %p620_p6, %p619_p5 }
 0x161   :  { %p622_p8 = pnand %p621_p7, %p615_p4 }
 0x163   :  { %625 = shalt.err (!%p622_p8)
}
 0x164   :  { %s626_s26 = scalar_lea.hbm %s784_s6, 32 }
 0x165   :  { %p627_p9 = scmp.ne.s32.totalorder %s784_s6, %s626_s26  ;;  %p630_p10 = scmp.lt.u32.totalorder %s626_s26, %s784_s6 }
 0x167   :  { %p632_p11 = pnand %p630_p10, %p627_p9 }
 0x169   :  { %635 = shalt.err (!%p632_p11)
}
 0x16a   :  { %421 = dma.vmem_to_hbm [thread:$0]  %s419_s15, 32, %s784_s6, [#allocation10]  }
 0x16b   :  { %640 = dma.done.wait [#allocation4], 32  }
 0x16c   :  { %641 = vsyncadd [#allocation4], 4294967264 }
 0x16d   :  { %642 = dma.done.wait [#allocation10], 32  }
 0x16e   :  { %643 = vsyncadd [#allocation10], 4294967264 }
 0x16f   :  { %428 = vsyncpa [#allocation3], 1 }
 0x170   :  { %429 = vsyncpa [#allocation6], 1 }
 0x171   :  { %430 = vsyncpa [#allocation4], 1 }
 0x172   :  { %431 = vsyncpa [#allocation10], 1 }

</bundles_post_ra>
